<compile_context>
chip_gen: v6e
topology: v6e:2x2x1
jax: 0.10.0
libtpu: 0.0.40
codegen_flags: <defaults>
</compile_context>

<pallas_src>
from math import sqrt

import jax
import jax.numpy as jnp
import numpy as np
from jax.experimental import pallas as pl
from jax.experimental.pallas import tpu as pltpu


def _round_up(x: int, m: int) -> int:
    return ((x + m - 1) // m) * m


def _sublane_multiple(dtype) -> int:
    # Native packed-vreg sublane granularity: 8 (f32), 16 (bf16), 32 (int8/fp8).
    return max(8, 32 // np.dtype(dtype).itemsize)


# --------------------------------------------------------------------------- #
# Kernels
# --------------------------------------------------------------------------- #
def _matmul_scale_kernel(x_ref, w_ref, s_ref, o_ref):
    """Single K tile: out = (x @ w) * s, f32 accumulation on the MXU."""
    acc = jnp.dot(x_ref[...], w_ref[...], preferred_element_type=jnp.float32)
    o_ref[...] = (acc * s_ref[...]).astype(o_ref.dtype)


def _matmul_scale_acc_kernel(x_ref, w_ref, s_ref, o_ref, acc_ref):
    """K-tiled: accumulate over grid axis 2 in an f32 VMEM scratch."""
    k = pl.program_id(2)

    @pl.when(k == 0)
    def _():
        acc_ref[...] = jnp.zeros_like(acc_ref)

    acc_ref[...] += jnp.dot(x_ref[...], w_ref[...],
                            preferred_element_type=jnp.float32)

    @pl.when(k == pl.num_programs(2) - 1)
    def _():
        o_ref[...] = (acc_ref[...] * s_ref[...]).astype(o_ref.dtype)


# --------------------------------------------------------------------------- #
# Weight preprocessing (once per weight update)
# --------------------------------------------------------------------------- #
def prepare_linear_weight(weight, eps: float = 1e-4, *, compute_dtype=None,
                          tn_cap: int = 1024, tk_cap: int = 1024):
    """Pad/cast/transpose the weight and hoist the per-row normalization.

    Returns (w_p, s_p, dim_in, dim_out, tn, tk) where w_p is the (K_pad, N_pad)
    transposed weight in the MXU compute dtype and s_p is the (1, N_pad) f32
    per-output-column scale (row normalization * 1/sqrt(fan_in)).
    """
    dim_out, dim_in = weight.shape
    compute_dtype = weight.dtype if compute_dtype is None else compute_dtype

    # 1 / max(||w_n||, eps) == min(rsqrt(sum w_n^2), 1/eps)   (eps > 0)
    # Single pass over the native-dtype weight with f32 accumulation.
    ssq = jnp.einsum("nk,nk->n", weight, weight,
                     preferred_element_type=jnp.float32)
    scale = jnp.minimum(jax.lax.rsqrt(ssq), jnp.float32(1.0 / eps))
    scale = scale * jnp.float32(1.0 / sqrt(dim_in))

    # Lane-aligned tiles (caps are multiples of 256 for the v6e/v7x MXU).
    tn = min(tn_cap, _round_up(dim_out, 128))
    tk = min(tk_cap, _round_up(dim_in, 128))
    n_pad = _round_up(dim_out, tn)
    k_pad = _round_up(dim_in, tk)

    # Pre-transpose to (K, N): the kernel contracts with a plain jnp.dot and
    # never transposes the weight tile on the XLU inside the hot loop.
    w_p = jnp.pad(weight.T.astype(compute_dtype),
                  ((0, k_pad - dim_in), (0, n_pad - dim_out)))
    # Padded output columns get scale 0 and are sliced away afterwards.
    s_p = jnp.pad(scale, (0, n_pad - dim_out)).reshape(1, n_pad)
    return w_p, s_p, dim_in, dim_out, tn, tk


# --------------------------------------------------------------------------- #
# Forward
# --------------------------------------------------------------------------- #
def linear_apply(x, prepared, *, tm_cap: int = 512, out_dtype=None):
    w_p, s_p, dim_in, dim_out, tn, tk = prepared
    *lead, x_dim_in = x.shape
    assert x_dim_in == dim_in, "weight/input dim mismatch"
    out_dtype = x.dtype if out_dtype is None else out_dtype
    compute_dtype = w_p.dtype

    x2d = x.reshape(-1, dim_in).astype(compute_dtype)
    m = x2d.shape[0]
    k_pad, n_pad = w_p.shape

    sub = _sublane_multiple(compute_dtype)
    tm = min(tm_cap, _round_up(m, sub))
    m_pad = _round_up(m, tm)

    # v7x has 2 TensorCores: if both parallel axes would yield a single tile,
    # split N so each core gets work (n_pad stays divisible since tn % 256 == 0).
    if m_pad // tm == 1 and n_pad // tn == 1 and tn >= 256 and tn % 256 == 0:
        tn //= 2

    x_p = jnp.pad(x2d, ((0, m_pad - m), (0, k_pad - dim_in)))

    ib = np.dtype(compute_dtype).itemsize
    ob = np.dtype(out_dtype).itemsize
    grid_mn = (m_pad // tm, n_pad // tn)
    single_k = (k_pad == tk)

    if single_k:
        grid = grid_mn
        in_specs = [
            pl.BlockSpec((tm, tk), lambda i, j: (i, 0)),   # x tile
            pl.BlockSpec((tk, tn), lambda i, j: (0, j)),   # (K, N) weight tile
            pl.BlockSpec((1, tn), lambda i, j: (0, j)),    # column scale
        ]
        out_specs = pl.BlockSpec((tm, tn), lambda i, j: (i, j))
        scratch = []
        kernel = _matmul_scale_kernel
        semantics = ("parallel", "parallel")
        work = 2 * (tm * tk + tk * tn) * ib + 2 * tn * 4 + 2 * tm * tn * ob
    else:
        grid = (*grid_mn, k_pad // tk)
        in_specs = [
            pl.BlockSpec((tm, tk), lambda i, j, k: (i, k)),
            pl.BlockSpec((tk, tn), lambda i, j, k: (k, j)),
            pl.BlockSpec((1, tn), lambda i, j, k: (0, j)),
        ]
        out_specs = pl.BlockSpec((tm, tn), lambda i, j, k: (i, j))
        scratch = [pltpu.VMEM((tm, tn), jnp.float32)]
        kernel = _matmul_scale_acc_kernel
        semantics = ("parallel", "parallel", "arbitrary")
        work = (2 * (tm * tk + tk * tn) * ib + 2 * tn * 4
                + tm * tn * 4 + 2 * tm * tn * ob)

    # Raise scoped VMEM above the 16/32 MiB defaults; stay under v7x's 64 MiB.
    vmem_limit = int(min(max(work * 3 // 2, 32 << 20), 56 << 20))

    cost = pl.CostEstimate(
        flops=2 * m * dim_out * dim_in,
        transcendentals=0,
        bytes_accessed=(m * dim_in * ib + dim_in * dim_out * ib
                        + m * dim_out * ob),
    )

    out_p = pl.pallas_call(
        kernel,
        out_shape=jax.ShapeDtypeStruct((m_pad, n_pad), out_dtype),
        grid_spec=pltpu.PrefetchScalarGridSpec(
            num_scalar_prefetch=0,
            grid=grid,
            in_specs=in_specs,
            out_specs=out_specs,
            scratch_shapes=scratch,
        ),
        compiler_params=pltpu.CompilerParams(
            dimension_semantics=semantics,
            vmem_limit_bytes=vmem_limit,
        ),
        cost_estimate=cost,
    )(x_p, w_p, s_p)

    return out_p[:m, :dim_out].reshape(*lead, dim_out)


def linear_forward(x, weight, eps: float = 1e-4, *, compute_dtype=None,
                   tm_cap: int = 512, tn_cap: int = 1024, tk_cap: int = 1024):
    """Convenience path: Linear.forward (eval mode) in one call."""
    prepared = prepare_linear_weight(weight, eps, compute_dtype=compute_dtype,
                                     tn_cap=tn_cap, tk_cap=tk_cap)
    return linear_apply(x, prepared, tm_cap=tm_cap, out_dtype=x.dtype)


def linear_forward_ref(x, weight, eps: float = 1e-4):
    """Pure-JAX reference mirroring the PyTorch forward exactly."""
    w = weight.astype(jnp.float32)
    row_norm = jnp.sqrt(jnp.sum(w * w, axis=-1, keepdims=True))
    w_scaled = w / jnp.maximum(row_norm, eps) / sqrt(x.shape[-1])
    return jnp.einsum("...k,nk->...n",
                      x.astype(jnp.float32), w_scaled).astype(x.dtype)


if __name__ == "__main__":
    # Module config: dim_in=32, dim_out=64; input x: (batch=2, seq=8, dim_in=32)
    dim_in, dim_out = 32, 64
    eps = 1e-4

    key = jax.random.PRNGKey(0)
    k_w, k_x = jax.random.split(key)
    weight = jax.random.normal(k_w, (dim_out, dim_in), dtype=jnp.float32)
    x = jax.random.normal(k_x, (2, 8, dim_in), dtype=jnp.float32)

    ref = linear_forward_ref(x, weight, eps=eps)

    # f32 MXU path (strict check against the reference).
    out = jax.block_until_ready(linear_forward(x, weight, eps=eps))
    assert out.shape == (2, 8, dim_out), out.shape
    assert jnp.allclose(out, ref, atol=1e-5, rtol=1e-5), "f32 path mismatch"

    # bf16 MXU path with the weight prepared once (decode-style reuse);
    # f32 accumulation, looser tolerance for the bf16 operand rounding.
    prepared = prepare_linear_weight(weight, eps, compute_dtype=jnp.bfloat16)
    out_bf16 = jax.block_until_ready(linear_apply(x, prepared, out_dtype=x.dtype))
    assert out_bf16.shape == (2, 8, dim_out), out_bf16.shape
    assert jnp.allclose(out_bf16, ref, atol=5e-2, rtol=5e-2), "bf16 path mismatch"

    print("KERNEL_OK")
</pallas_src>

<mosaic_0001>
module attributes {stable_mosaic.version = 11 : i64} {
  func.func @_matmul_scale_kernel(%arg0: i32, %arg1: i32, %arg2: memref<16x128xf32, #tpu.memory_space<vmem>>, %arg3: memref<128x128xf32, #tpu.memory_space<vmem>>, %arg4: memref<1x128xf32, #tpu.memory_space<vmem>>, %arg5: memref<16x128xf32, #tpu.memory_space<vmem>>) attributes {dimension_semantics = [#tpu.dimension_semantics<parallel>, #tpu.dimension_semantics<parallel>], iteration_bounds = array<i64: 1, 1>, scalar_prefetch = 0 : i64, scratch_operands = 0 : i64, tpu.core_type = #tpu.core_type<tc>, window_params = [{transform_indices = @transform_0, window_bounds = array<i64: 16, 128>}, {transform_indices = @transform_1, window_bounds = array<i64: 128, 128>}, {transform_indices = @transform_2, window_bounds = array<i64: 1, 128>}, {transform_indices = @transform_3, window_bounds = array<i64: 16, 128>}]} {
    %c0 = arith.constant 0 : index
    %c0_0 = arith.constant 0 : index
    %0 = vector.load %arg2[%c0, %c0_0] : memref<16x128xf32, #tpu.memory_space<vmem>>, vector<16x128xf32>
    %c0_1 = arith.constant 0 : index
    %c0_2 = arith.constant 0 : index
    %1 = vector.load %arg3[%c0_1, %c0_2] : memref<128x128xf32, #tpu.memory_space<vmem>>, vector<128x128xf32>
    %cst = arith.constant dense<0.000000e+00> : vector<16x128xf32>
    %2 = tpu.matmul %0, %1, %cst {dimension_numbers = #tpu.dot_dimension_numbers<[1], [0], [0], [1], [0, 0, 1, 1], [], []>} : vector<16x128xf32>, vector<128x128xf32>, vector<16x128xf32> -> vector<16x128xf32>
    %c0_3 = arith.constant 0 : index
    %c0_4 = arith.constant 0 : index
    %3 = vector.load %arg4[%c0_3, %c0_4] : memref<1x128xf32, #tpu.memory_space<vmem>>, vector<1x128xf32>
    %4 = vector.broadcast %3 : vector<1x128xf32> to vector<16x128xf32>
    %5 = arith.mulf %2, %4 : vector<16x128xf32>
    %c0_5 = arith.constant 0 : index
    %c0_6 = arith.constant 0 : index
    %6 = vector.load %arg5[%c0_5, %c0_6] : memref<16x128xf32, #tpu.memory_space<vmem>>, vector<16x128xf32>
    tpu.vector_store %arg5[%c0_5, %c0_6], %5 {strides = array<i32>} : memref<16x128xf32, #tpu.memory_space<vmem>>, vector<16x128xf32>,
    return
  }
  func.func @transform_0(%arg0: i32, %arg1: i32) -> (i32, i32) {
    %c0_i32 = arith.constant 0 : i32
    %c0_i32_0 = arith.constant 0 : i32
    return %arg0, %c0_i32 : i32, i32
  }
  func.func @transform_1(%arg0: i32, %arg1: i32) -> (i32, i32) {
    %c0_i32 = arith.constant 0 : i32
    %c0_i32_0 = arith.constant 0 : i32
    return %c0_i32, %arg1 : i32, i32
  }
  func.func @transform_2(%arg0: i32, %arg1: i32) -> (i32, i32) {
    %c0_i32 = arith.constant 0 : i32
    %c0_i32_0 = arith.constant 0 : i32
    return %c0_i32, %arg1 : i32, i32
  }
  func.func @transform_3(%arg0: i32, %arg1: i32) -> (i32, i32) {
    %c0_i32 = arith.constant 0 : i32
    return %arg0, %arg1 : i32, i32
  }
}

</mosaic_0001>

<bundles_post_ra>
// kernel: tpu_custom_call.1
= control target key start
LH: loop header
LB: loop body
LE: loop exit
PB: predicated region body
PF: predicated region fallthrough
CT: control target
= control target key end

     0   :  { %8 = vsyncpa [#allocation3], 0  ;;  %s336_s0 = inlined_call_operand.hbm [shape: f32[16,128], index: 0, kind: input, shape index: {}]   ;;  %s337_s1 = inlined_call_operand.hbm [shape: f32[128,128], index: 1, kind: input, shape index: {}]   ;;  %s338_s2 = inlined_call_operand.vmem [shape: f32[1,128], index: 2, kind: input, shape index: {}]   ;;  %s339_s3 = inlined_call_operand.hbm [shape: f32[16,128], index: 3, kind: output, shape index: {}]  }
   0x1   :  { %9 = vsyncpa [#allocation6], 0 }
   0x2   :  { %10 = vsyncpa [#allocation4], 0  ;;  %s290_s12 = smov [#allocation2]  }
   0x3   :  { %s16_s13 = sshll.u32 %s290_s12, 4  ;;  %s17_s13 = int_to_ptr.vmem [resolvable:$true] %s16_s13 }
   0x4   :  { %s232_s14 = scalar_lea.vmem %s17_s13, 256  ;;  %p237_p1 = scmp.lt.s32.totalorder %s17_s13, %s17_s13 }
   0x5   :  { %p233_p0 = scmp.ne.s32.totalorder %s17_s13, %s232_s14  ;;  %p238_p2 = scmp.lt.s32.totalorder %s232_s14, %s232_s14 }
   0x7   :  { %p239_p3 = por %p238_p2, %p237_p1 }
   0x9   :  { %p240_p4 = pnand %p239_p3, %p233_p0 }
   0xb   :  { %243 = shalt.err (!%p240_p4)
}
   0xc   :  { %s291_s15 = smov 128   ;;  %s292_s16 = smov 8  }
   0xd   :  { %22 = dma.hbm_to_vmem [thread:$0]  %s336_s0, 256, %s17_s13, [#allocation3], %s291_s15, %s291_s15, %s292_s16  }
   0xe   :  { %s293_s19 = smov [#allocation5]  }
   0xf   :  { %s28_s20 = sshll.u32 %s293_s19, 4  ;;  %s29_s20 = int_to_ptr.vmem [resolvable:$true] %s28_s20 }
  0x10   :  { %s252_s21 = scalar_lea.vmem %s29_s20, 2048  ;;  %p257_p6 = scmp.lt.s32.totalorder %s29_s20, %s29_s20 }
  0x11   :  { %p253_p5 = scmp.ne.s32.totalorder %s29_s20, %s252_s21  ;;  %p258_p7 = scmp.lt.s32.totalorder %s252_s21, %s252_s21 }
  0x13   :  { %p259_p8 = por %p258_p7, %p257_p6 }
  0x15   :  { %p260_p9 = pnand %p259_p8, %p253_p5 }
  0x17   :  { %263 = shalt.err (!%p260_p9)
}
  0x18   :  { %34 = dma.hbm_to_vmem [thread:$0]  %s337_s1, 2048, %s29_s20, [#allocation6], %s291_s15, %s291_s15, %s292_s16  }
  0x19   :  { %284 = dma.done.wait [#allocation3], 256  }
  0x1a   :  { %285 = vsyncadd [#allocation3], 4294967040 }
  0x1b   :  { %286 = dma.done.wait [#allocation6], 2048  }
  0x1c   :  { %287 = vsyncadd [#allocation6], 4294965248  ;;  %v60_v0 = vld [vmem:[#allocation5 + $0x78] sm:$0xff]  ;;  %v59_v1 = vld [vmem:[#allocation5 + $0x70] sm:$0xff]  ;;  %s294_s24 = smov [#allocation7]  }
  0x1d   :  { %184 = vmatprep.subr.mxu0 %v60_v0  ;;  %v58_v2 = vld [vmem:[#allocation5 + $0x68] sm:$0xff]  ;;  %v57_v3 = vld [vmem:[#allocation5 + $0x60] sm:$0xff]  ;;  %v43_v4 = vld [vmem:[#allocation2] sm:$0xff]  ;;  %s152_s25 = sshll.u32 %s294_s24, 4  ;;  %s153_s25 = int_to_ptr.vmem [resolvable:$true] %s152_s25 }
  0x1e   :  { %185 = vmatpush3.msra.mxu0 %v60_v0  ;;  %v56_v5 = vld [vmem:[#allocation5 + $0x58] sm:$0xff]  ;;  %216 = vmatprep.mubr.f32.mxu0 %v43_v4  ;;  %v55_v6 = vld [vmem:[#allocation5 + $0x50] sm:$0xff]  ;;  %v54_v7 = vld [vmem:[#allocation5 + $0x48] sm:$0xff]  ;;  %s264_s26 = scalar_lea.vmem %s153_s25, 256  ;;  %p269_p11 = scmp.lt.s32.totalorder %s153_s25, %s153_s25 }
  0x1f   :  { %186 = vmatprep.subr.mxu0 %v59_v1  ;;  %v53_v8 = vld [vmem:[#allocation5 + $0x40] sm:$0xff]  ;;  %v52_v9 = vld [vmem:[#allocation5 + $0x38] sm:$0xff]  ;;  %v51_v10 = vld [vmem:[#allocation5 + $0x30] sm:$0xff]  ;;  %p265_p10 = scmp.ne.s32.totalorder %s153_s25, %s264_s26  ;;  %p270_p12 = scmp.lt.s32.totalorder %s264_s26, %s264_s26 }
  0x20   :  { %187 = vmatpush3.msra.mxu0 %v59_v1  ;;  %v50_v11 = vld [vmem:[#allocation5 + $0x28] sm:$0xff]  ;;  %v49_v12 = vld [vmem:[#allocation5 + $0x20] sm:$0xff]  ;;  %v48_v13 = vld [vmem:[#allocation5 + $0x18] sm:$0xff] }
  0x21   :  { %188 = vmatprep.subr.mxu0 %v58_v2  ;;  %v47_v14 = vld [vmem:[#allocation5 + $0x10] sm:$0xff]  ;;  %v46_v15 = vld [vmem:[#allocation5 + $0x8] sm:$0xff]  ;;  %v45_v16 = vld [vmem:[#allocation5] sm:$0xff]  ;;  %p271_p13 = por %p270_p12, %p269_p11 }
  0x22   :  { %189 = vmatpush3.msra.mxu0 %v58_v2  ;;  %v44_v17 = vld [vmem:[#allocation2 + $0x8] sm:$0xff]  ;;  %v165_v18 = vld [vmem:[%s338_s2] ss:$0 sm:$0xff] }
  0x23   :  { %190 = vmatprep.subr.mxu0 %v57_v3  ;;  %p272_p0 = pnand %p271_p13, %p265_p10 }
  0x24   :  { %191 = vmatpush3.msra.mxu0 %v57_v3 }
  0x25   :  { %192 = vmatprep.subr.mxu0 %v56_v5 }
  0x26   :  { %193 = vmatpush3.msra.mxu0 %v56_v5 }
  0x27   :  { %194 = vmatprep.subr.mxu0 %v55_v6 }
  0x28   :  { %195 = vmatpush3.msra.mxu0 %v55_v6 }
  0x29   :  { %196 = vmatprep.subr.mxu0 %v54_v7 }
  0x2a   :  { %197 = vmatpush3.msra.mxu0 %v54_v7 }
  0x2b   :  { %198 = vmatprep.subr.mxu0 %v53_v8 }
  0x2c   :  { %199 = vmatpush3.msra.mxu0 %v53_v8 }
  0x2d   :  { %200 = vmatprep.subr.mxu0 %v52_v9 }
  0x2e   :  { %201 = vmatpush3.msra.mxu0 %v52_v9 }
  0x2f   :  { %202 = vmatprep.subr.mxu0 %v51_v10 }
  0x30   :  { %203 = vmatpush3.msra.mxu0 %v51_v10 }
  0x31   :  { %204 = vmatprep.subr.mxu0 %v50_v11 }
  0x32   :  { %205 = vmatpush3.msra.mxu0 %v50_v11 }
  0x33   :  { %206 = vmatprep.subr.mxu0 %v49_v12 }
  0x34   :  { %207 = vmatpush3.msra.mxu0 %v49_v12 }
  0x35   :  { %208 = vmatprep.subr.mxu0 %v48_v13 }
  0x36   :  { %209 = vmatpush3.msra.mxu0 %v48_v13 }
  0x37   :  { %210 = vmatprep.subr.mxu0 %v47_v14 }
  0x38   :  { %211 = vmatpush3.msra.mxu0 %v47_v14 }
  0x39   :  { %212 = vmatprep.subr.mxu0 %v46_v15 }
  0x3a   :  { %213 = vmatpush3.msra.mxu0 %v46_v15 }
  0x3b   :  { %214 = vmatprep.subr.mxu0 %v45_v16 }
  0x3c   :  { %215 = vmatpush3.msra.mxu0 %v45_v16 }
  0x3d   :  { %217 = vmatmul.mubr.f32.vlgmr.msra.gmra.mxu0 %v44_v17 }
  0xfd   :  { %v218_v19 = vpop.f32.mrf.mxu0 }
  0xfe   :  { %v144_v20 = vmul.f32 %v218_v19, %v165_v18 }
  0xff   :  { %v127_v21 = vpop.f32.mrf.mxu0 }
 0x100   :  { %146 = vst [vmem:[#allocation7 + $0x8] sm:$0xff] %v144_v20  ;;  %v143_v22 = vmul.f32 %v165_v18, %v127_v21 }
 0x102   :  { %145 = vst [vmem:[#allocation7] sm:$0xff] %v143_v22 }
 0x103   :  { %275 = shalt.err (!%p272_p0)
}
 0x104   :  { %158 = dma.vmem_to_hbm [thread:$0]  %s153_s25, 256, %s339_s3, [#allocation4], %s291_s15, %s291_s15, %s292_s16  }
 0x105   :  { %288 = dma.done.wait [#allocation4], 256  }
 0x106   :  { %289 = vsyncadd [#allocation4], 4294967040 }
 0x107   :  { %162 = vsyncpa [#allocation3], 1 }
 0x108   :  { %163 = vsyncpa [#allocation6], 1 }
 0x109   :  { %164 = vsyncpa [#allocation4], 1 }

</bundles_post_ra>
